<compile_context>
chip_gen: v7x
topology: tpu7x:2x2x1
jax: 0.10.0
libtpu: 0.0.40
codegen_flags: <defaults>
</compile_context>

<pallas_src>
import functools

import jax
import jax.numpy as jnp
from jax.experimental import pallas as pl
from jax.experimental.pallas import tpu as pltpu


def _round_up(x, m):
    return ((x + m - 1) // m) * m


def _pick_tn(dp, target=512):
    """Largest multiple of 128 that divides dp and is <= target (dp is a 128-multiple)."""
    best = 128
    t = 128
    while t <= min(dp, target):
        if dp % t == 0:
            best = t
        t += 128
    return best


def _gating_kernel(x_ref, w_ref, b_ref, o_ref, *, tn, cols):
    # emb row slab (tm, Dp) f32 — resident across the column grid axis.
    x = x_ref[...]
    # emb @ W.T realized directly: contract the feature axes of both operands.
    # bf16 inputs, f32 accumulation on the MXU.
    logits = jax.lax.dot_general(
        x.astype(jnp.bfloat16), w_ref[...],
        dimension_numbers=(((1,), (1,)), ((), ())),
        preferred_element_type=jnp.float32)           # (tm, tn)
    gate = jax.nn.sigmoid(logits + b_ref[...])        # EUP sigmoid, f32
    if cols == 1:
        x_cols = x                                    # whole feature dim in this tile
    else:
        # aligned VMEM slice of the resident row slab (no extra HBM traffic)
        col0 = pl.multiple_of(pl.program_id(1) * tn, 128)
        x_cols = x_ref[:, pl.ds(col0, tn)]
    o_ref[...] = (x_cols * gate).astype(o_ref.dtype)  # VPU elementwise gate


def gating_layer(emb, weight, bias, *, tm=512):
    """out = emb * sigmoid(emb @ weight.T + bias). weight is torch Linear layout (D, D)."""
    N, D = emb.shape
    assert weight.shape == (D, D) and bias.shape == (D,)

    # Lane-dense feature dim: pad D to a multiple of 128.
    Dp = _round_up(D, 128)
    # Output-column tile: bounds the streamed weight slab (v7x VMEM safe).
    tn = _pick_tn(Dp, 512)
    cols = Dp // tn

    # Row tile: big enough to amortize per-grid-step overhead (~0.35 us/step), not bigger
    # than the (row-padded) input, shrunk until the double-buffered working set fits a
    # conservative VMEM budget (headroom on v7x's 64 MiB).
    tm = max(8, min(tm, _round_up(N, 8)))

    def vmem_bytes(tm_):
        return (2 * tm_ * Dp * 4        # emb row slab, f32, double-buffered
                + 2 * tn * Dp * 2       # weight tile, bf16, double-buffered
                + 2 * tm_ * tn * 4      # output tile, f32, double-buffered
                + 2 * tn * 4)           # bias tile

    budget = 40 * 1024 * 1024
    while tm > 64 and vmem_bytes(tm) > budget:
        tm = _round_up(max(64, tm // 2), 8)

    Np = _round_up(N, tm)
    rows = Np // tm

    # Zero-pad: padded rows/cols produce exact zeros and are sliced away below.
    x_p = jnp.pad(emb.astype(jnp.float32), ((0, Np - N), (0, Dp - D)))
    w_p = jnp.pad(weight, ((0, Dp - D), (0, Dp - D))).astype(jnp.bfloat16)
    b_p = jnp.pad(bias, (0, Dp - D)).reshape(1, Dp).astype(jnp.float32)

    kernel = functools.partial(_gating_kernel, tn=tn, cols=cols)
    out_p = pl.pallas_call(
        kernel,
        out_shape=jax.ShapeDtypeStruct((Np, Dp), emb.dtype),
        grid_spec=pltpu.PrefetchScalarGridSpec(
            num_scalar_prefetch=0,
            grid=(rows, cols),
            in_specs=[
                pl.BlockSpec((tm, Dp), lambda i, j: (i, 0)),   # emb row slab (reused over j)
                pl.BlockSpec((tn, Dp), lambda i, j: (j, 0)),   # weight rows for this out-col tile
                pl.BlockSpec((1, tn), lambda i, j: (0, j)),    # bias slice
            ],
            out_specs=pl.BlockSpec((tm, tn), lambda i, j: (i, j)),
        ),
        compiler_params=pltpu.CompilerParams(
            dimension_semantics=("parallel", "arbitrary"),
            vmem_limit_bytes=int(min(2 * vmem_bytes(tm) + (8 << 20), 64 << 20)),
        ),
    )(x_p, w_p, b_p)
    return out_p[:N, :D]


def gating_layer_ref(emb, weight, bias):
    return emb * jax.nn.sigmoid(emb @ weight.T + bias)


if __name__ == "__main__":
    key = jax.random.PRNGKey(0)
    k_emb, k_w, k_b = jax.random.split(key, 3)

    N, D = 256, 64                                    # small demo shapes (dim=64 GatingLayer)
    emb = jax.random.normal(k_emb, (N, D), dtype=jnp.float32)
    bound = 1.0 / jnp.sqrt(D)
    weight = jax.random.uniform(k_w, (D, D), minval=-bound, maxval=bound,
                                dtype=jnp.float32)
    bias = jax.random.uniform(k_b, (D,), minval=-bound, maxval=bound,
                              dtype=jnp.float32)

    out = jax.block_until_ready(gating_layer(emb, weight, bias))
    ref = gating_layer_ref(emb, weight, bias)
    assert out.shape == (N, D)
    assert jnp.allclose(out, ref, atol=2e-2, rtol=2e-2), (
        f"mismatch vs reference, max err {jnp.max(jnp.abs(out - ref))}")

    # Ragged batch (N not a multiple of the tile) — exercises the row-padding path.
    out2 = jax.block_until_ready(gating_layer(emb[:100], weight, bias))
    ref2 = gating_layer_ref(emb[:100], weight, bias)
    assert out2.shape == (100, D)
    assert jnp.allclose(out2, ref2, atol=2e-2, rtol=2e-2), "mismatch vs reference (ragged N)"

    print("KERNEL_OK")
</pallas_src>

<mosaic_0001>
module attributes {stable_mosaic.version = 11 : i64} {
  func.func @_gating_kernel(%arg0: i32, %arg1: i32, %arg2: memref<256x128xf32, #tpu.memory_space<vmem>>, %arg3: memref<128x128xbf16, #tpu.memory_space<vmem>>, %arg4: memref<1x128xf32, #tpu.memory_space<vmem>>, %arg5: memref<256x128xf32, #tpu.memory_space<vmem>>) attributes {dimension_semantics = [#tpu.dimension_semantics<parallel>, #tpu.dimension_semantics<arbitrary>], iteration_bounds = array<i64: 1, 1>, scalar_prefetch = 0 : i64, scratch_operands = 0 : i64, tpu.core_type = #tpu.core_type<tc>, window_params = [{transform_indices = @transform_0, window_bounds = array<i64: 256, 128>}, {transform_indices = @transform_1, window_bounds = array<i64: 128, 128>}, {transform_indices = @transform_2, window_bounds = array<i64: 1, 128>}, {transform_indices = @transform_3, window_bounds = array<i64: 256, 128>}]} {
    %c0 = arith.constant 0 : index
    %c0_0 = arith.constant 0 : index
    %0 = vector.load %arg2[%c0, %c0_0] : memref<256x128xf32, #tpu.memory_space<vmem>>, vector<256x128xf32>
    %1 = arith.truncf %0 : vector<256x128xf32> to vector<256x128xbf16>
    %c0_1 = arith.constant 0 : index
    %c0_2 = arith.constant 0 : index
    %2 = vector.load %arg3[%c0_1, %c0_2] : memref<128x128xbf16, #tpu.memory_space<vmem>>, vector<128x128xbf16>
    %cst = arith.constant dense<0.000000e+00> : vector<256x128xf32>
    %3 = tpu.matmul %1, %2, %cst {dimension_numbers = #tpu.dot_dimension_numbers<[1], [1], [0], [0], [0, 0, 1, 0], [], []>} : vector<256x128xbf16>, vector<128x128xbf16>, vector<256x128xf32> -> vector<256x128xf32>
    %c0_3 = arith.constant 0 : index
    %c0_4 = arith.constant 0 : index
    %4 = vector.load %arg4[%c0_3, %c0_4] : memref<1x128xf32, #tpu.memory_space<vmem>>, vector<1x128xf32>
    %5 = vector.broadcast %4 : vector<1x128xf32> to vector<256x128xf32>
    %6 = arith.addf %3, %5 : vector<256x128xf32>
    %7 = arith.negf %6 : vector<256x128xf32>
    %8 = math.exp %7 : vector<256x128xf32>
    %cst_5 = arith.constant 1.000000e+00 : f32
    %9 = vector.broadcast %cst_5 : f32 to vector<256x128xf32>
    %10 = arith.addf %9, %8 : vector<256x128xf32>
    %11 = arith.divf %9, %10 : vector<256x128xf32>
    %12 = arith.mulf %0, %11 : vector<256x128xf32>
    %c0_6 = arith.constant 0 : index
    %c0_7 = arith.constant 0 : index
    %13 = vector.load %arg5[%c0_6, %c0_7] : memref<256x128xf32, #tpu.memory_space<vmem>>, vector<256x128xf32>
    tpu.vector_store %arg5[%c0_6, %c0_7], %12 {strides = array<i32>} : memref<256x128xf32, #tpu.memory_space<vmem>>, vector<256x128xf32>,
    return
  }
  func.func @transform_0(%arg0: i32, %arg1: i32) -> (i32, i32) {
    %c0_i32 = arith.constant 0 : i32
    %c0_i32_0 = arith.constant 0 : i32
    return %arg0, %c0_i32 : i32, i32
  }
  func.func @transform_1(%arg0: i32, %arg1: i32) -> (i32, i32) {
    %c0_i32 = arith.constant 0 : i32
    %c0_i32_0 = arith.constant 0 : i32
    return %arg1, %c0_i32 : i32, i32
  }
  func.func @transform_2(%arg0: i32, %arg1: i32) -> (i32, i32) {
    %c0_i32 = arith.constant 0 : i32
    %c0_i32_0 = arith.constant 0 : i32
    return %c0_i32, %arg1 : i32, i32
  }
  func.func @transform_3(%arg0: i32, %arg1: i32) -> (i32, i32) {
    %c0_i32 = arith.constant 0 : i32
    return %arg0, %arg1 : i32, i32
  }
}

</mosaic_0001>

<bundles_post_ra>
// kernel: tpu_custom_call.1
= control target key start
LH: loop header
LB: loop body
LE: loop exit
PB: predicated region body
PF: predicated region fallthrough
CT: control target
= control target key end

     0   :  { %8 = vsyncpa [#allocation3], 0  ;;  %s1203_s0 = inlined_call_operand.hbm [shape: f32[256,128], index: 0, kind: input, shape index: {}]   ;;  %s1204_s1 = inlined_call_operand.hbm [shape: bf16[128,128], index: 1, kind: input, shape index: {}]   ;;  %s1205_s2 = inlined_call_operand.vmem [shape: f32[1,128], index: 2, kind: input, shape index: {}]   ;;  %s1206_s3 = inlined_call_operand.hbm [shape: f32[256,128], index: 3, kind: output, shape index: {}]  }
   0x1   :  { %9 = vsyncpa [#allocation6], 0 }
   0x2   :  { %10 = vsyncpa [#allocation4], 0  ;;  %s942_s12 = smov [#allocation2]   ;;  %s870_s16 = scalar_lea.hbm %s1203_s0, 4096 }
   0x3   :  { %s16_s13 = sshll.u32 %s942_s12, 4  ;;  %p871_p0 = scmp.ne.s32.totalorder %s1203_s0, %s870_s16  ;;  %s17_s13 = int_to_ptr.vmem [resolvable:$true] %s16_s13 }
   0x4   :  { %p874_p1 = scmp.lt.u32.totalorder %s870_s16, %s1203_s0 }
   0x6   :  { %p876_p2 = pnand %p874_p1, %p871_p0 }
   0x8   :  { %879 = shalt.err (!%p876_p2)
}
   0x9   :  { %s880_s21 = scalar_lea.vmem %s17_s13, 4096  ;;  %p885_p4 = scmp.lt.s32.totalorder %s17_s13, %s17_s13 }
   0xa   :  { %p881_p3 = scmp.ne.s32.totalorder %s17_s13, %s880_s21  ;;  %p886_p5 = scmp.lt.s32.totalorder %s880_s21, %s880_s21 }
   0xc   :  { %p887_p6 = por %p886_p5, %p885_p4 }
   0xe   :  { %p888_p7 = pnand %p887_p6, %p881_p3 }
  0x10   :  { %891 = shalt.err (!%p888_p7)
}
  0x11   :  { %s943_s22 = smov 128   ;;  %s944_s23 = smov 8  }
  0x12   :  { %22 = dma.hbm_to_vmem [thread:$0]  %s1203_s0, 4096, %s17_s13, [#allocation3], %s943_s22, %s943_s22, %s944_s23  }
  0x13   :  { %s945_s26 = smov [#allocation5]   ;;  %s892_s30 = scalar_lea.hbm %s1204_s1, 1024 }
  0x14   :  { %s28_s27 = sshll.u32 %s945_s26, 4  ;;  %p893_p8 = scmp.ne.s32.totalorder %s1204_s1, %s892_s30  ;;  %s29_s27 = int_to_ptr.vmem [resolvable:$true] %s28_s27 }
  0x15   :  { %p896_p9 = scmp.lt.u32.totalorder %s892_s30, %s1204_s1 }
  0x17   :  { %p898_p10 = pnand %p896_p9, %p893_p8 }
  0x19   :  { %901 = shalt.err (!%p898_p10)
}
  0x1a   :  { %s902_s8 = scalar_lea.vmem %s29_s27, 1024  ;;  %p907_p12 = scmp.lt.s32.totalorder %s29_s27, %s29_s27 }
  0x1b   :  { %p903_p11 = scmp.ne.s32.totalorder %s29_s27, %s902_s8  ;;  %p908_p13 = scmp.lt.s32.totalorder %s902_s8, %s902_s8 }
  0x1d   :  { %p909_p0 = por %p908_p13, %p907_p12 }
  0x1f   :  { %p910_p1 = pnand %p909_p0, %p903_p11 }
  0x21   :  { %913 = shalt.err (!%p910_p1)
}
  0x22   :  { %s946_s0 = smov 64   ;;  %s947_s9 = smov 4  }
  0x23   :  { %34 = dma.hbm_to_vmem [thread:$0]  %s1204_s1, 1024, %s29_s27, [#allocation6], %s946_s0, %s946_s0, %s947_s9  }
  0x24   :  { %936 = dma.done.wait [#allocation3], 4096  }
  0x25   :  { %937 = vsyncadd [#allocation3], 4294963200 }
  0x26   :  { %938 = dma.done.wait [#allocation6], 1024  }
  0x27   :  { %939 = vsyncadd [#allocation6], 4294966272  ;;  %v734_v0 = vld [vmem:[#allocation5] sm:$0xff]   ;;  %v735_v1 = vld [vmem:[#allocation5 + $0x8] sm:$0xff]  }
  0x28   :  { %663 = vmatprep.subr.bf16.mxu0 %v734_v0  ;;  %711 = vmatprep.subr.bf16.mxu1 %v734_v0  ;;  %v736_v2 = vld [vmem:[#allocation5 + $0x10] sm:$0xff]   ;;  %v996_v3 = vld [vmem:[#allocation2] sm:$0xff]  ;;  %v998_v4 = vld [vmem:[#allocation2 + $0x8] sm:$0xff] }
  0x29   :  { %664 = vmatpush3.bf16.xpose.msra.mxu0 %v734_v0  ;;  %719 = vmatpush3.bf16.xpose.msra.mxu1 %v734_v0  ;;  %v1000_v5 = vld [vmem:[#allocation2 + $0x80] sm:$0xff]  ;;  %v76_v6 = vpack.c.bf16 %v998_v4, %v996_v3  ;;  %v1004_v7 = vld [vmem:[#allocation2 + $0x88] sm:$0xff]  ;;  %v737_v9 = vld [vmem:[#allocation5 + $0x18] sm:$0xff]  }
  0x2a   :  { %665 = vmatprep.subr.bf16.mxu0 %v735_v1  ;;  %712 = vmatprep.subr.bf16.mxu1 %v735_v1  ;;  %v84_v8 = vpack.c.bf16 %v1004_v7, %v1000_v5  ;;  %v738_v10 = vld [vmem:[#allocation5 + $0x20] sm:$0xff]   ;;  %v739_v11 = vld [vmem:[#allocation5 + $0x28] sm:$0xff]   ;;  %v740_v12 = vld [vmem:[#allocation5 + $0x30] sm:$0xff]  }
  0x2b   :  { %679 = vmatprep.mubr.bf16.mxu0 %v76_v6  ;;  %v741_v13 = vld [vmem:[#allocation5 + $0x38] sm:$0xff]   ;;  %v1008_v14 = vld [vmem:[#allocation2 + $0x10] sm:$0xff]  ;;  %v1016_v18 = vld [vmem:[#allocation2 + $0x20] sm:$0xff] }
  0x2c   :  { %695 = vmatprep.mubr.bf16.mxu1 %v84_v8  ;;  %v1010_v15 = vld [vmem:[#allocation2 + $0x18] sm:$0xff]  ;;  %v1012_v16 = vld [vmem:[#allocation2 + $0x90] sm:$0xff]  ;;  %v1018_v19 = vld [vmem:[#allocation2 + $0x28] sm:$0xff] }
  0x2d   :  { %v1014_v17 = vld [vmem:[#allocation2 + $0x98] sm:$0xff]  ;;  %v1020_v20 = vld [vmem:[#allocation2 + $0xa0] sm:$0xff]  ;;  %v1022_v21 = vld [vmem:[#allocation2 + $0xa8] sm:$0xff]  ;;  %v77_v22 = vpack.c.bf16 %v1010_v15, %v1008_v14  ;;  %v78_v24 = vpack.c.bf16 %v1018_v19, %v1016_v18 }
  0x2e   :  { %v85_v23 = vpack.c.bf16 %v1014_v17, %v1012_v16  ;;  %v86_v25 = vpack.c.bf16 %v1022_v21, %v1020_v20  ;;  %v1032_v26 = vld [vmem:[#allocation2 + $0x30] sm:$0xff]  ;;  %v1034_v27 = vld [vmem:[#allocation2 + $0x38] sm:$0xff]  ;;  %v1040_v30 = vld [vmem:[#allocation2 + $0x40] sm:$0xff] }
  0x2f   :  { %v1036_v28 = vld [vmem:[#allocation2 + $0xb0] sm:$0xff]  ;;  %v1038_v29 = vld [vmem:[#allocation2 + $0xb8] sm:$0xff]  ;;  %v1042_v31 = vld [vmem:[#allocation2 + $0x48] sm:$0xff]  ;;  %v79_v34 = vpack.c.bf16 %v1034_v27, %v1032_v26 }
  0x30   :  { %v1044_v32 = vld [vmem:[#allocation2 + $0xc0] sm:$0xff]  ;;  %v1046_v33 = vld [vmem:[#allocation2 + $0xc8] sm:$0xff]  ;;  %v87_v35 = vpack.c.bf16 %v1038_v29, %v1036_v28  ;;  %v80_v36 = vpack.c.bf16 %v1042_v31, %v1040_v30  ;;  %v1056_v38 = vld [vmem:[#allocation2 + $0x50] sm:$0xff] }
  0x31   :  { %666 = vmatpush3.bf16.xpose.msra.mxu0 %v735_v1  ;;  %720 = vmatpush3.bf16.xpose.msra.mxu1 %v735_v1  ;;  %v88_v37 = vpack.c.bf16 %v1046_v33, %v1044_v32  ;;  %v1058_v39 = vld [vmem:[#allocation2 + $0x58] sm:$0xff]  ;;  %v1060_v40 = vld [vmem:[#allocation2 + $0xd0] sm:$0xff]  ;;  %v1064_v42 = vld [vmem:[#allocation2 + $0x60] sm:$0xff] }
  0x32   :  { %667 = vmatprep.subr.bf16.mxu0 %v736_v2  ;;  %713 = vmatprep.subr.bf16.mxu1 %v736_v2  ;;  %v1062_v41 = vld [vmem:[#allocation2 + $0xd8] sm:$0xff]  ;;  %v1066_v43 = vld [vmem:[#allocation2 + $0x68] sm:$0xff]  ;;  %v1068_v44 = vld [vmem:[#allocation2 + $0xe0] sm:$0xff]  ;;  %v81_v46 = vpack.c.bf16 %v1058_v39, %v1056_v38 }
  0x33   :  { %1209 = vst [vmem:[#allocation11_spill] sm:$0xff] %v1066_v43  ;;  %v1070_v45 = vld [vmem:[#allocation2 + $0xe8] sm:$0xff]  ;;  %v89_v47 = vpack.c.bf16 %v1062_v41, %v1060_v40  ;;  %v82_v48 = vpack.c.bf16 %v1066_v43, %v1064_v42  ;;  %v1080_v50 = vld [vmem:[#allocation2 + $0x70] sm:$0xff]  ;;  %v1082_v51 = vld [vmem:[#allocation2 + $0x78] sm:$0xff] }
  0x34   :  { %1210 = vst [vmem:[#allocation12_spill] sm:$0xff] %v1070_v45  ;;  %v90_v49 = vpack.c.bf16 %v1070_v45, %v1068_v44  ;;  %v1084_v52 = vld [vmem:[#allocation2 + $0xf0] sm:$0xff]  ;;  %v1086_v53 = vld [vmem:[#allocation2 + $0xf8] sm:$0xff]  ;;  %v83_v54 = vpack.c.bf16 %v1082_v51, %v1080_v50  ;;  %v1095_v56 = vld [vmem:[%s1205_s2] ss:$0 sm:$0xff]  ;;  %s948_s2 = smov [#allocation7]  }
  0x35   :  { %v91_v55 = vpack.c.bf16 %v1086_v53, %v1084_v52  ;;  %s585_s13 = sshll.u32 %s948_s2, 4  ;;  %s586_s13 = int_to_ptr.vmem [resolvable:$true] %s585_s13 }
  0x36   :  { %s914_s14 = scalar_lea.vmem %s586_s13, 4096  ;;  %p919_p3 = scmp.lt.s32.totalorder %s586_s13, %s586_s13 }
  0x37   :  { %p915_p2 = scmp.ne.s32.totalorder %s586_s13, %s914_s14  ;;  %p920_p4 = scmp.lt.s32.totalorder %s914_s14, %s914_s14 }
  0x39   :  { %668 = vmatpush3.bf16.xpose.msra.mxu0 %v736_v2  ;;  %721 = vmatpush3.bf16.xpose.msra.mxu1 %v736_v2  ;;  %p921_p5 = por %p920_p4, %p919_p3 }
  0x3a   :  { %669 = vmatprep.subr.bf16.mxu0 %v737_v9  ;;  %714 = vmatprep.subr.bf16.mxu1 %v737_v9 }
  0x3b   :  { %p922_p6 = pnand %p921_p5, %p915_p2 }
  0x41   :  { %670 = vmatpush3.bf16.xpose.msra.mxu0 %v737_v9  ;;  %722 = vmatpush3.bf16.xpose.msra.mxu1 %v737_v9 }
  0x42   :  { %671 = vmatprep.subr.bf16.mxu0 %v738_v10  ;;  %715 = vmatprep.subr.bf16.mxu1 %v738_v10 }
  0x49   :  { %672 = vmatpush3.bf16.xpose.msra.mxu0 %v738_v10  ;;  %723 = vmatpush3.bf16.xpose.msra.mxu1 %v738_v10 }
  0x4a   :  { %673 = vmatprep.subr.bf16.mxu0 %v739_v11  ;;  %716 = vmatprep.subr.bf16.mxu1 %v739_v11 }
  0x51   :  { %674 = vmatpush3.bf16.xpose.msra.mxu0 %v739_v11  ;;  %724 = vmatpush3.bf16.xpose.msra.mxu1 %v739_v11 }
  0x52   :  { %675 = vmatprep.subr.bf16.mxu0 %v740_v12  ;;  %717 = vmatprep.subr.bf16.mxu1 %v740_v12 }
  0x59   :  { %676 = vmatpush3.bf16.xpose.msra.mxu0 %v740_v12  ;;  %725 = vmatpush3.bf16.xpose.msra.mxu1 %v740_v12 }
  0x5a   :  { %677 = vmatprep.subr.bf16.mxu0 %v741_v13  ;;  %718 = vmatprep.subr.bf16.mxu1 %v741_v13 }
  0x61   :  { %678 = vmatpush3.bf16.xpose.msra.mxu0 %v741_v13  ;;  %726 = vmatpush3.bf16.xpose.msra.mxu1 %v741_v13 }
  0x68   :  { %680 = vmatmul.mubr.bf16.vlgmr.msra.gmra.mrb[0].mxu0 %v77_v22  ;;  %696 = vmatmul.mubr.bf16.vlgmr.msra.gmra.mrb[0].mxu1 %v85_v23 }
  0x69   :  { %683 = vmatprep.mubr.bf16.mxu0 %v78_v24  ;;  %699 = vmatprep.mubr.bf16.mxu1 %v86_v25 }
  0x70   :  { %684 = vmatmul.mubr.bf16.gmra.mrb[4].mxu0 %v79_v34  ;;  %700 = vmatmul.mubr.bf16.gmra.mrb[4].mxu1 %v87_v35 }
  0x71   :  { %687 = vmatprep.mubr.bf16.mxu0 %v80_v36  ;;  %703 = vmatprep.mubr.bf16.mxu1 %v88_v37 }
  0x78   :  { %688 = vmatmul.mubr.bf16.gmra.mrb[8].mxu0 %v81_v46  ;;  %704 = vmatmul.mubr.bf16.gmra.mrb[8].mxu1 %v89_v47 }
  0x79   :  { %691 = vmatprep.mubr.bf16.mxu0 %v82_v48  ;;  %707 = vmatprep.mubr.bf16.mxu1 %v90_v49 }
  0x80   :  { %692 = vmatmul.mubr.bf16.gmra.mrb[12].mxu0 %v83_v54  ;;  %708 = vmatmul.mubr.bf16.gmra.mrb[12].mxu1 %v91_v55 }
 0x13b   :  { %v681_v57 = vpop.f32.mrb[0].mxu0  ;;  %v697_v58 = vpop.f32.mrb[0].mxu1 }
 0x13c   :  { %v206_v59 = vadd.f32 %v681_v57, %v1095_v56  ;;  %v270_v60 = vadd.f32 %v697_v58, %v1095_v56  ;;  %v197_v61 = vpop.f32.mrb[1].mxu0  ;;  %v261_v62 = vpop.f32.mrb[1].mxu1 }
 0x13d   :  { %v198_v63 = vadd.f32 %v1095_v56, %v197_v61  ;;  %v262_v0 = vadd.f32 %v1095_v56, %v261_v62  ;;  %v682_v1 = vpop.f32.mrb[2].mxu0  ;;  %v698_v2 = vpop.f32.mrb[2].mxu1 }
 0x13e   :  { %v609_v6 = vmul.f32 -1.442695, %v206_v59  ;;  %v625_v8 = vmul.f32 -1.442695, %v270_v60  ;;  %v209_v9 = vadd.f32 %v682_v1, %v1095_v56  ;;  %v273_v10 = vadd.f32 %v698_v2, %v1095_v56  ;;  %v200_v11 = vpop.f32.mrb[3].mxu0  ;;  %v264_v12 = vpop.f32.mrb[3].mxu1 }
 0x13f   :  { %v607_v13 = vmul.f32 -1.442695, %v198_v63  ;;  %v623_v22 = vmul.f32 -1.442695, %v262_v0  ;;  %v201_v23 = vadd.f32 %v1095_v56, %v200_v11  ;;  %v265_v24 = vadd.f32 %v1095_v56, %v264_v12 }
 0x140   :  { %742 = vpow2.f32 %v609_v6  ;;  %v610_v25 = vmul.f32 -1.442695, %v209_v9  ;;  %v626_v34 = vmul.f32 -1.442695, %v273_v10 }
 0x141   :  { %744 = vpow2.f32 %v625_v8  ;;  %v608_v35 = vmul.f32 -1.442695, %v201_v23  ;;  %v624_v36 = vmul.f32 -1.442695, %v265_v24 }
 0x142   :  { %746 = vpow2.f32 %v607_v13 }
 0x143   :  { %748 = vpow2.f32 %v623_v22  ;;  %v685_v37 = vpop.f32.mrb[4].mxu0  ;;  %v701_v46 = vpop.f32.mrb[4].mxu1 }
 0x144   :  { %750 = vpow2.f32 %v610_v25  ;;  %v222_v47 = vadd.f32 %v685_v37, %v1095_v56  ;;  %v286_v48 = vadd.f32 %v701_v46, %v1095_v56  ;;  %v213_v49 = vpop.f32.mrb[5].mxu0  ;;  %v277_v54 = vpop.f32.mrb[5].mxu1 }
 0x145   :  { %752 = vpow2.f32 %v626_v34  ;;  %v214_v55 = vadd.f32 %v1095_v56, %v213_v49  ;;  %v278_v57 = vadd.f32 %v1095_v56, %v277_v54  ;;  %v686_v58 = vpop.f32.mrb[6].mxu0  ;;  %v702_v59 = vpop.f32.mrb[6].mxu1 }
 0x146   :  { %754 = vpow2.f32 %v608_v35  ;;  %v613_v60 = vmul.f32 -1.442695, %v222_v47  ;;  %v629_v61 = vmul.f32 -1.442695, %v286_v48  ;;  %v225_v62 = vadd.f32 %v686_v58, %v1095_v56  ;;  %v216_v63 = vpop.f32.mrb[7].mxu0  ;;  %v280_v0 = vpop.f32.mrb[7].mxu1 }
 0x147   :  { %756 = vpow2.f32 %v624_v36  ;;  %v611_v1 = vmul.f32 -1.442695, %v214_v55  ;;  %v627_v2 = vmul.f32 -1.442695, %v278_v57 }
 0x148   :  { %758 = vpow2.f32 %v613_v60  ;;  %v614_v6 = vmul.f32 -1.442695, %v225_v62 }
 0x149   :  { %760 = vpow2.f32 %v629_v61 }
 0x14a   :  { %v743_v8 = vpop.eup %742  ;;  %762 = vpow2.f32 %v611_v1  ;;  %v289_v1 = vadd.f32 %v702_v59, %v1095_v56 }
 0x14b   :  { %v745_v9 = vpop.eup %744  ;;  %v422_v10 = vadd.f32 1.0, %v743_v8  ;;  %764 = vpow2.f32 %v627_v2  ;;  %v689_v11 = vpop.f32.mrb[8].mxu0  ;;  %v217_v8 = vadd.f32 %v1095_v56, %v216_v63 }
 0x14c   :  { %v705_v12 = vpop.f32.mrb[8].mxu1  ;;  %v747_v13 = vpop.eup %746  ;;  %v438_v22 = vadd.f32 1.0, %v745_v9  ;;  %766 = vpow2.f32 %v614_v6 }
 0x14d   :  { %v229_v23 = vpop.f32.mrb[9].mxu0  ;;  %v293_v24 = vpop.f32.mrb[9].mxu1  ;;  %768 = vrcp.f32 %v422_v10  ;;  %v420_v34 = vadd.f32 1.0, %v747_v13 }
 0x14e   :  { %v749_v25 = vpop.eup %748  ;;  %v690_v35 = vpop.f32.mrb[10].mxu0  ;;  %770 = vrcp.f32 %v438_v22  ;;  %v281_v22 = vadd.f32 %v1095_v56, %v280_v0 }
 0x14f   :  { %v1110_v36 = vpop.f32.mrb[10].mxu1  ;;  %v751_v37 = vpop.eup %750  ;;  %v436_v46 = vadd.f32 1.0, %v749_v25  ;;  %772 = vrcp.f32 %v420_v34 }
 0x150   :  { %v1112_v47 = vpop.f32.mrb[11].mxu0  ;;  %v753_v48 = vpop.eup %752  ;;  %v423_v49 = vadd.f32 1.0, %v751_v37 }
 0x151   :  { %v1114_v54 = vpop.f32.mrb[11].mxu1  ;;  %v755_v55 = vpop.eup %754  ;;  %774 = vrcp.f32 %v436_v46  ;;  %v439_v57 = vadd.f32 1.0, %v753_v48  ;;  %v238_v48 = vadd.f32 %v689_v11, %v1095_v56  ;;  %v230_v11 = vadd.f32 %v1095_v56, %v229_v23 }
 0x152   :  { %v757_v58 = vpop.eup %756  ;;  %776 = vrcp.f32 %v423_v49  ;;  %v421_v60 = vadd.f32 1.0, %v755_v55 }
 0x153   :  { %v759_v61 = vpop.eup %758  ;;  %778 = vrcp.f32 %v439_v57  ;;  %v437_v62 = vadd.f32 1.0, %v757_v58  ;;  %v693_v9 = vpop.f32.mrb[12].mxu0  ;;  %v630_v57 = vmul.f32 -1.442695, %v289_v1  ;;  %v302_v58 = vadd.f32 %v705_v12, %v1095_v56 }
 0x154   :  { %v761_v2 = vpop.eup %760  ;;  %780 = vrcp.f32 %v421_v60  ;;  %v426_v6 = vadd.f32 1.0, %v759_v61  ;;  %v709_v25 = vpop.f32.mrb[12].mxu1  ;;  %v294_v1 = vadd.f32 %v1095_v56, %v293_v24  ;;  %v617_v43 = vmul.f32 -1.442695, %v238_v48 }
 0x155   :  { %v763_v10 = vpop.eup %762  ;;  %782 = vrcp.f32 %v437_v62  ;;  %v442_v13 = vadd.f32 1.0, %v761_v2  ;;  %v1119_v34 = vpop.f32.mrb[13].mxu0  ;;  %v612_v2 = vmul.f32 -1.442695, %v217_v8  ;;  %v633_v8 = vmul.f32 -1.442695, %v302_v58 }
 0x156   :  { %v765_v37 = vpop.eup %764  ;;  %784 = vrcp.f32 %v426_v6  ;;  %v424_v46 = vadd.f32 1.0, %v763_v10  ;;  %v1122_v59 = vpop.f32.mrb[13].mxu1  ;;  %v254_v58 = vadd.f32 %v693_v9, %v1095_v56 }
 0x157   :  { %v1124_v49 = vpop.f32.mrb[14].mxu0  ;;  %v767_v55 = vpop.eup %766  ;;  %786 = vrcp.f32 %v442_v13  ;;  %v440_v63 = vadd.f32 1.0, %v765_v37  ;;  %v628_v13 = vmul.f32 -1.442695, %v281_v22  ;;  %v615_v22 = vmul.f32 -1.442695, %v230_v11 }
 0x158   :  { %v1127_v60 = vpop.f32.mrb[14].mxu1  ;;  %v1129_v0 = vpop.f32.mrb[15].mxu0  ;;  %788 = vrcp.f32 %v424_v46  ;;  %v427_v62 = vadd.f32 1.0, %v767_v55  ;;  %v241_v46 = vadd.f32 %v690_v35, %v1095_v56  ;;  %v297_v35 = vadd.f32 %v1095_v56, %v1114_v54 }
 0x159   :  { %v769_v61 = vpop.eup %768  ;;  %v1132_v6 = vpop.f32.mrb[15].mxu1  ;;  %790 = vrcp.f32 %v440_v63 }
 0x15a   :  { %v771_v10 = vpop.eup %770  ;;  %v518_v45 = vmul.f32 %v769_v61, %v1008_v14  ;;  %792 = vrcp.f32 %v427_v62  ;;  %v305_v14 = vadd.f32 %v1110_v36, %v1095_v56 }
 0x15b   :  { %v773_v12 = vpop.eup %772  ;;  %v534_v37 = vmul.f32 %v771_v10, %v1012_v16  ;;  %794 = vpow2.f32 %v630_v57  ;;  %v233_v16 = vadd.f32 %v1095_v56, %v1112_v47 }
 0x15c   :  { %v775_v55 = vpop.eup %774  ;;  %550 = vst [vmem:[#allocation7 + $0x10] sm:$0xff] %v518_v45  ;;  %v516_v23 = vmul.f32 %v773_v12, %v996_v3  ;;  %796 = vpow2.f32 %v612_v2  ;;  %v631_v3 = vmul.f32 -1.442695, %v294_v1  ;;  %v634_v62 = vmul.f32 -1.442695, %v305_v14 }
 0x15d   :  { %v777_v63 = vpop.eup %776  ;;  %566 = vst [vmem:[#allocation7 + $0x90] sm:$0xff] %v534_v37  ;;  %v532_v24 = vmul.f32 %v775_v55, %v1000_v5  ;;  %798 = vpow2.f32 %v628_v13  ;;  %v618_v5 = vmul.f32 -1.442695, %v241_v46  ;;  %v616_v11 = vmul.f32 -1.442695, %v233_v16 }
 0x15e   :  { %v779_v48 = vpop.eup %778  ;;  %548 = vst [vmem:[#allocation7] sm:$0xff] %v516_v23  ;;  %v519_v45 = vmul.f32 %v777_v63, %v1010_v15  ;;  %800 = vpow2.f32 %v617_v43  ;;  %v318_v15 = vadd.f32 %v709_v25, %v1095_v56  ;;  %v632_v43 = vmul.f32 -1.442695, %v297_v35 }
 0x15f   :  { %v781_v57 = vpop.eup %780  ;;  %564 = vst [vmem:[#allocation7 + $0x80] sm:$0xff] %v532_v24  ;;  %v535_v36 = vmul.f32 %v779_v48, %v1014_v17  ;;  %802 = vpow2.f32 %v633_v8  ;;  %v621_v13 = vmul.f32 -1.442695, %v254_v58  ;;  %v310_v58 = vadd.f32 %v1095_v56, %v1122_v59 }
 0x160   :  { %v783_v61 = vpop.eup %782  ;;  %551 = vst [vmem:[#allocation7 + $0x18] sm:$0xff] %v519_v45  ;;  %v517_v47 = vmul.f32 %v781_v57, %v998_v4  ;;  %804 = vpow2.f32 %v615_v22  ;;  %v246_v57 = vadd.f32 %v1095_v56, %v1119_v34 }
 0x161   :  { %v785_v2 = vpop.eup %784  ;;  %567 = vst [vmem:[#allocation7 + $0x98] sm:$0xff] %v535_v36  ;;  %v533_v54 = vmul.f32 %v783_v61, %v1004_v7  ;;  %806 = vpow2.f32 %v631_v3  ;;  %v637_v7 = vmul.f32 -1.442695, %v318_v15 }
 0x162   :  { %v787_v10 = vpop.eup %786  ;;  %549 = vst [vmem:[#allocation7 + $0x8] sm:$0xff] %v517_v47  ;;  %v522_v17 = vmul.f32 %v785_v2, %v1032_v26  ;;  %808 = vpow2.f32 %v618_v5 }
 0x163   :  { %v789_v9 = vpop.eup %788  ;;  %565 = vst [vmem:[#allocation7 + $0x88] sm:$0xff] %v533_v54  ;;  %v538_v4 = vmul.f32 %v787_v10, %v1036_v28  ;;  %810 = vpow2.f32 %v634_v62  ;;  %v257_v62 = vadd.f32 %v1124_v49, %v1095_v56  ;;  %v321_v54 = vadd.f32 %v1127_v60, %v1095_v56 }
 0x164   :  { %v791_v1 = vpop.eup %790  ;;  %554 = vst [vmem:[#allocation7 + $0x30] sm:$0xff] %v522_v17  ;;  %v520_v25 = vmul.f32 %v789_v9, %v1016_v18  ;;  %812 = vpow2.f32 %v616_v11  ;;  %v619_v10 = vmul.f32 -1.442695, %v246_v57  ;;  %v249_v17 = vadd.f32 %v1095_v56, %v1129_v0 }
 0x165   :  { %v793_v12 = vpop.eup %792  ;;  %570 = vst [vmem:[#allocation7 + $0xb0] sm:$0xff] %v538_v4  ;;  %v536_v37 = vmul.f32 %v791_v1, %v1020_v20  ;;  %814 = vpow2.f32 %v632_v43  ;;  %v635_v9 = vmul.f32 -1.442695, %v310_v58  ;;  %v313_v49 = vadd.f32 %v1095_v56, %v1132_v6 }
 0x166   :  { %v795_v26 = vpop.eup %794  ;;  %552 = vst [vmem:[#allocation7 + $0x20] sm:$0xff] %v520_v25  ;;  %v523_v46 = vmul.f32 %v793_v12, %v1034_v27  ;;  %816 = vpow2.f32 %v621_v13  ;;  %v622_v1 = vmul.f32 -1.442695, %v257_v62 }
 0x167   :  { %v797_v55 = vpop.eup %796  ;;  %568 = vst [vmem:[#allocation7 + $0xa0] sm:$0xff] %v536_v37  ;;  %v443_v28 = vadd.f32 1.0, %v795_v26  ;;  %818 = vpow2.f32 %v637_v7  ;;  %v638_v7 = vmul.f32 -1.442695, %v321_v54  ;;  %v620_v37 = vmul.f32 -1.442695, %v249_v17 }
 0x168   :  { %v799_v23 = vpop.eup %798  ;;  %555 = vst [vmem:[#allocation7 + $0x38] sm:$0xff] %v523_v46  ;;  %v425_v8 = vadd.f32 1.0, %v797_v55  ;;  %v636_v6 = vmul.f32 -1.442695, %v313_v49  ;;  %v1211_v54 = vld [vmem:[#allocation11_spill] sm:$0xff] }
 0x169   :  { %v801_v18 = vpop.eup %800  ;;  %820 = vrcp.f32 %v443_v28  ;;  %v441_v14 = vadd.f32 1.0, %v799_v23 }
 0x16a   :  { %v803_v63 = vpop.eup %802  ;;  %822 = vrcp.f32 %v425_v8  ;;  %v430_v20 = vadd.f32 1.0, %v801_v18 }
 0x16b   :  { %v805_v24 = vpop.eup %804  ;;  %824 = vrcp.f32 %v441_v14  ;;  %v446_v22 = vadd.f32 1.0, %v803_v63 }
 0x16c   :  { %v807_v16 = vpop.eup %806  ;;  %826 = vrcp.f32 %v430_v20  ;;  %v428_v27 = vadd.f32 1.0, %v805_v24 }
 0x16d   :  { %v809_v48 = vpop.eup %808  ;;  %828 = vrcp.f32 %v446_v22  ;;  %v444_v45 = vadd.f32 1.0, %v807_v16 }
 0x16e   :  { %v811_v3 = vpop.eup %810  ;;  %830 = vrcp.f32 %v428_v27  ;;  %v431_v35 = vadd.f32 1.0, %v809_v48 }
 0x16f   :  { %v813_v36 = vpop.eup %812  ;;  %832 = vrcp.f32 %v444_v45  ;;  %v447_v5 = vadd.f32 1.0, %v811_v3 }
 0x170   :  { %v815_v61 = vpop.eup %814  ;;  %834 = vrcp.f32 %v431_v35  ;;  %v429_v47 = vadd.f32 1.0, %v813_v36 }
 0x171   :  { %v817_v15 = vpop.eup %816  ;;  %836 = vrcp.f32 %v447_v5  ;;  %v445_v2 = vadd.f32 1.0, %v815_v61 }
 0x172   :  { %v819_v11 = vpop.eup %818  ;;  %838 = vrcp.f32 %v429_v47  ;;  %v434_v34 = vadd.f32 1.0, %v817_v15 }
 0x173   :  { %v821_v59 = vpop.eup %820  ;;  %840 = vrcp.f32 %v445_v2  ;;  %v450_v43 = vadd.f32 1.0, %v819_v11 }
 0x174   :  { %v823_v4 = vpop.eup %822  ;;  %v539_v13 = vmul.f32 %v821_v59, %v1038_v29  ;;  %842 = vrcp.f32 %v434_v34  ;;  %v1212_v34 = vld [vmem:[#allocation12_spill] sm:$0xff] }
 0x175   :  { %v825_v60 = vpop.eup %824  ;;  %v521_v25 = vmul.f32 %v823_v4, %v1018_v19  ;;  %844 = vrcp.f32 %v450_v43 }
 0x176   :  { %v827_v12 = vpop.eup %826  ;;  %571 = vst [vmem:[#allocation7 + $0xb8] sm:$0xff] %v539_v13  ;;  %v537_v0 = vmul.f32 %v825_v60, %v1022_v21  ;;  %846 = vpow2.f32 %v619_v10 }
 0x177   :  { %v829_v26 = vpop.eup %828  ;;  %553 = vst [vmem:[#allocation7 + $0x28] sm:$0xff] %v521_v25  ;;  %v526_v56 = vmul.f32 %v827_v12, %v1056_v38  ;;  %848 = vpow2.f32 %v635_v9 }
 0x178   :  { %v831_v29 = vpop.eup %830  ;;  %569 = vst [vmem:[#allocation7 + $0xa8] sm:$0xff] %v537_v0  ;;  %v542_v46 = vmul.f32 %v829_v26, %v1060_v40  ;;  %850 = vpow2.f32 %v622_v1 }
 0x179   :  { %v833_v19 = vpop.eup %832  ;;  %558 = vst [vmem:[#allocation7 + $0x50] sm:$0xff] %v526_v56  ;;  %v524_v55 = vmul.f32 %v831_v29, %v1040_v30  ;;  %852 = vpow2.f32 %v638_v7 }
 0x17a   :  { %v835_v28 = vpop.eup %834  ;;  %574 = vst [vmem:[#allocation7 + $0xd0] sm:$0xff] %v542_v46  ;;  %v540_v21 = vmul.f32 %v833_v19, %v1044_v32  ;;  %854 = vpow2.f32 %v620_v37 }
 0x17b   :  { %v837_v23 = vpop.eup %836  ;;  %556 = vst [vmem:[#allocation7 + $0x40] sm:$0xff] %v524_v55  ;;  %v527_v38 = vmul.f32 %v835_v28, %v1058_v39  ;;  %856 = vpow2.f32 %v636_v6 }
 0x17c   :  { %v839_v8 = vpop.eup %838  ;;  %572 = vst [vmem:[#allocation7 + $0xc0] sm:$0xff] %v540_v21  ;;  %v543_v40 = vmul.f32 %v837_v23, %v1062_v41 }
 0x17d   :  { %v841_v18 = vpop.eup %840  ;;  %559 = vst [vmem:[#allocation7 + $0x58] sm:$0xff] %v527_v38  ;;  %v525_v14 = vmul.f32 %v839_v8, %v1042_v31 }
 0x17e   :  { %v843_v30 = vpop.eup %842  ;;  %575 = vst [vmem:[#allocation7 + $0xd8] sm:$0xff] %v543_v40  ;;  %v541_v63 = vmul.f32 %v841_v18, %v1046_v33 }
 0x17f   :  { %v845_v20 = vpop.eup %844  ;;  %557 = vst [vmem:[#allocation7 + $0x48] sm:$0xff] %v525_v14  ;;  %v530_v32 = vmul.f32 %v843_v30, %v1080_v50 }
 0x180   :  { %v847_v24 = vpop.eup %846  ;;  %573 = vst [vmem:[#allocation7 + $0xc8] sm:$0xff] %v541_v63  ;;  %v546_v39 = vmul.f32 %v845_v20, %v1084_v52 }
 0x181   :  { %v849_v22 = vpop.eup %848  ;;  %562 = vst [vmem:[#allocation7 + $0x70] sm:$0xff] %v530_v32  ;;  %v432_v16 = vadd.f32 1.0, %v847_v24 }
 0x182   :  { %v851_v41 = vpop.eup %850  ;;  %578 = vst [vmem:[#allocation7 + $0xf0] sm:$0xff] %v546_v39  ;;  %v448_v27 = vadd.f32 1.0, %v849_v22 }
 0x183   :  { %v853_v48 = vpop.eup %852  ;;  %858 = vrcp.f32 %v432_v16  ;;  %v435_v31 = vadd.f32 1.0, %v851_v41 }
 0x184   :  { %v855_v45 = vpop.eup %854  ;;  %860 = vrcp.f32 %v448_v27  ;;  %v451_v33 = vadd.f32 1.0, %v853_v48 }
 0x185   :  { %v857_v3 = vpop.eup %856  ;;  %862 = vrcp.f32 %v435_v31  ;;  %v433_v35 = vadd.f32 1.0, %v855_v45 }
 0x186   :  { %864 = vrcp.f32 %v451_v33  ;;  %v449_v50 = vadd.f32 1.0, %v857_v3 }
 0x187   :  { %866 = vrcp.f32 %v433_v35 }
 0x188   :  { %868 = vrcp.f32 %v449_v50 }
 0x18d   :  { %v859_v52 = vpop.eup %858 }
 0x18e   :  { %v861_v57 = vpop.eup %860  ;;  %v528_v36 = vmul.f32 %v859_v52, %v1064_v42 }
 0x18f   :  { %v863_v5 = vpop.eup %862  ;;  %v544_v58 = vmul.f32 %v861_v57, %v1068_v44 }
 0x190   :  { %v865_v61 = vpop.eup %864  ;;  %560 = vst [vmem:[#allocation7 + $0x60] sm:$0xff] %v528_v36  ;;  %v531_v47 = vmul.f32 %v863_v5, %v1082_v51 }
 0x191   :  { %v867_v62 = vpop.eup %866  ;;  %576 = vst [vmem:[#allocation7 + $0xe0] sm:$0xff] %v544_v58  ;;  %v547_v15 = vmul.f32 %v865_v61, %v1086_v53 }
 0x192   :  { %v869_v2 = vpop.eup %868  ;;  %563 = vst [vmem:[#allocation7 + $0x78] sm:$0xff] %v531_v47  ;;  %v529_v11 = vmul.f32 %v867_v62, %v1211_v54 }
 0x193   :  { %579 = vst [vmem:[#allocation7 + $0xf8] sm:$0xff] %v547_v15  ;;  %v545_v42 = vmul.f32 %v869_v2, %v1212_v34 }
 0x194   :  { %561 = vst [vmem:[#allocation7 + $0x68] sm:$0xff] %v529_v11 }
 0x195   :  { %577 = vst [vmem:[#allocation7 + $0xe8] sm:$0xff] %v545_v42 }
 0x196   :  { %925 = shalt.err (!%p922_p6)
}
 0x197   :  { %s926_s17 = scalar_lea.hbm %s1206_s3, 4096 }
 0x198   :  { %p927_p7 = scmp.ne.s32.totalorder %s1206_s3, %s926_s17  ;;  %p930_p8 = scmp.lt.u32.totalorder %s926_s17, %s1206_s3 }
 0x19a   :  { %p932_p9 = pnand %p930_p8, %p927_p7 }
 0x19c   :  { %935 = shalt.err (!%p932_p9)
}
 0x19d   :  { %591 = dma.vmem_to_hbm [thread:$0]  %s586_s13, 4096, %s1206_s3, [#allocation4], %s943_s22, %s943_s22, %s944_s23  }
 0x19e   :  { %940 = dma.done.wait [#allocation4], 4096  }
 0x19f   :  { %941 = vsyncadd [#allocation4], 4294963200 }
 0x1a0   :  { %595 = vsyncpa [#allocation3], 1 }
 0x1a1   :  { %596 = vsyncpa [#allocation6], 1 }
 0x1a2   :  { %597 = vsyncpa [#allocation4], 1 }

</bundles_post_ra>
